<compile_context>
chip_gen: v7x
topology: tpu7x:2x2x1
jax: 0.10.0
libtpu: 0.0.40
codegen_flags: <defaults>
</compile_context>

<pallas_src>
import jax
import jax.numpy as jnp
from jax.experimental import pallas as pl
from jax.experimental.pallas import tpu as pltpu

MAXPAD = 3  # widest kernel is k=7 -> 3 taps on each side

SELU_ALPHA = 1.6732632423543772
SELU_SCALE = 1.0507009873554805


def _selu(x):
    # clamp the exp argument so the dead branch of the where never produces inf
    return SELU_SCALE * jnp.where(
        x > 0, x, SELU_ALPHA * (jnp.exp(jnp.minimum(x, 0.0)) - 1.0))


def residual_block_kernel(x_ref, w_ref, shift_ref, o_ref, xcl_ref, rhs_ref):
    # x_ref    : (TN, C_in, L)      unpadded input block, NCL (lane axis = L)
    # w_ref    : (3*C_out, 7*C_in)  im2col-fused conv weights (BN scale + identity folded)
    # shift_ref: (3*C_out, 1)       fused conv-bias + BN-shift (f32)
    # o_ref    : (TN, C_out, L)     lane-dense output block, NCL
    # xcl_ref  : (C_in, TN*L)       scratch: samples concatenated along the lane axis
    # rhs_ref  : (7*C_in, TN*L)     scratch: im2col RHS (tap-major, channel-minor rows)
    TN, C_in, L = x_ref.shape
    C_out = o_ref.shape[1]
    LT = TN * L

    # NCL tile -> lane-concatenated layout.  Each (C_in, L) sample tile is already
    # lane-dense, so these are whole-tile copies (no relayout work).
    for n in range(TN):
        xcl_ref[:, n * L:(n + 1) * L] = x_ref[n]

    x = xcl_ref[...]
    # per-sample lane position (samples sit at multiples of L along the lane axis)
    lane = jax.lax.broadcasted_iota(jnp.int32, (C_in, LT), 1) % L

    # Build the im2col RHS: row-block t holds x shifted by (t - 3) lanes with zeros at
    # every sample boundary ('same' padding).  Rolls go to the XLU, masks to the VPU.
    for t in range(7):
        d = t - MAXPAD
        if d == 0:
            tap = x
        else:
            tap = pltpu.roll(x, shift=(-d) % LT, axis=1)
            valid = (lane >= -d) if d < 0 else (lane < L - d)
            tap = jnp.where(valid, tap, jnp.zeros_like(tap))
        rhs_ref[t * C_in:(t + 1) * C_in, :] = tap

    # One fused MXU matmul covering all 3 branches x 7 taps x TN samples.
    acc = jnp.dot(w_ref[...], rhs_ref[...], preferred_element_type=jnp.float32)
    acc = acc + shift_ref[...]                 # (3*C_out, 1) broadcast, added once per step

    out1 = _selu(acc[0:C_out, :])              # k=3 branch (BN folded) + SELU
    out2 = _selu(acc[C_out:2 * C_out, :])      # k=5 branch (BN folded) + SELU
    out3 = acc[2 * C_out:3 * C_out, :]         # k=7 branch + residual identity (folded)
    y = _selu(out1 + out2 + out3).astype(o_ref.dtype)

    # Lane-aligned per-sample stores: each slice is a full (C_out, L) tile -> unmasked vst.
    for n in range(TN):
        o_ref[n] = y[:, n * L:(n + 1) * L]


def residual_block(x_ncl, params, *, tn=None, mxu_dtype=jnp.float32):
    """x_ncl: (N, C_in, L) float32, PyTorch NCL layout.  Returns (N, C_out, L) float32."""
    (w1, b1), (w2, b2), (w3, b3), bn1, bn2 = params
    N, C_in, L = x_ncl.shape
    C_out = w1.shape[0]                        # PyTorch Conv1d weight layout (C_out, C_in, K)
    assert C_in == C_out, "residual add requires in_channels == out_channels"

    # ---- host-side prep: fold eval-mode BN + residual identity into the weights -------
    def bn_fold(bn):
        gamma, beta, mean, var, eps = bn
        s = gamma / jnp.sqrt(var + eps)
        return s.astype(jnp.float32), (beta - mean * s).astype(jnp.float32)

    s1, t1 = bn_fold(bn1)
    s2, t2 = bn_fold(bn2)

    # Fused im2col weight (3*C_out, 7*C_in): contraction index = tap*C_in + c, where tap
    # t corresponds to a lane shift of (t-3); a K-wide 'same' conv (pad p=(K-1)//2)
    # occupies taps t = k + 3 - p.
    W = jnp.zeros((3 * C_out, 7 * C_in), jnp.float32)

    def place(W, w_oik, row0, scale):
        K = w_oik.shape[2]
        p = (K - 1) // 2
        w = w_oik.astype(jnp.float32)
        if scale is not None:
            w = w * scale[:, None, None]       # fold BN scale per output channel
        for k in range(K):
            t = k + MAXPAD - p
            W = W.at[row0:row0 + C_out, t * C_in:(t + 1) * C_in].set(w[:, :, k])
        return W

    W = place(W, w1, 0, s1)                    # k=3 branch, BN1 scale folded
    W = place(W, w2, C_out, s2)                # k=5 branch, BN2 scale folded
    W = place(W, w3, 2 * C_out, None)          # k=7 branch
    # residual identity rides the k=7 branch's center tap (conv is linear)
    W = W.at[2 * C_out:, MAXPAD * C_in:(MAXPAD + 1) * C_in].add(
        jnp.eye(C_out, C_in, dtype=jnp.float32))

    shift = jnp.concatenate([b1 * s1 + t1, b2 * s2 + t2, b3]).astype(
        jnp.float32).reshape(3 * C_out, 1)

    # ---- samples per grid step ---------------------------------------------------------
    if tn is None:
        # Big tiles (up to 64 samples/step) amortize the ~0.35us/step overhead, while an
        # even grid of >= 2 steps keeps both of v7x's TensorCores busy (harmless on
        # single-TC v5e/v6e).
        steps = max(2, pl.cdiv(N, 64))
        if steps % 2:
            steps += 1
        tn = max(1, pl.cdiv(N, steps))
    tn = min(tn, N)
    Np = pl.cdiv(N, tn) * tn

    x_in = x_ncl.astype(mxu_dtype)             # bf16 OK on v5e/v6e/v7x; accumulation stays f32
    W = W.astype(mxu_dtype)
    if Np != N:                                # rare tail pad; garbage rows sliced off below
        x_in = jnp.pad(x_in, ((0, Np - N), (0, 0), (0, 0)))

    grid = (Np // tn,)
    out = pl.pallas_call(
        residual_block_kernel,
        out_shape=jax.ShapeDtypeStruct((Np, C_out, L), jnp.float32),
        grid_spec=pltpu.PrefetchScalarGridSpec(
            num_scalar_prefetch=0,
            grid=grid,
            in_specs=[
                pl.BlockSpec((tn, C_in, L), lambda i: (i, 0, 0)),   # streamed NCL input
                pl.BlockSpec(W.shape, lambda i: (0, 0)),            # resident fused weights
                pl.BlockSpec(shift.shape, lambda i: (0, 0)),        # resident fused shift
            ],
            out_specs=pl.BlockSpec((tn, C_out, L), lambda i: (i, 0, 0)),
            scratch_shapes=[
                pltpu.VMEM((C_in, tn * L), mxu_dtype),       # lane-concatenated input
                pltpu.VMEM((7 * C_in, tn * L), mxu_dtype),   # im2col RHS
            ],
        ),
        compiler_params=pltpu.CompilerParams(
            dimension_semantics=("parallel",),
            vmem_limit_bytes=64 * 1024 * 1024,
        ),
    )(x_in, W, shift)

    return out[:N]


# ----------------------- pure-JAX reference (for verification) -----------------------
def reference(x_ncl, params):
    (w1, b1), (w2, b2), (w3, b3), bn1, bn2 = params

    def conv1d_same(x, w_oik, b):
        y = jax.lax.conv_general_dilated(
            x, w_oik, window_strides=(1,), padding="SAME",
            dimension_numbers=("NCH", "OIH", "NCH"))
        return y + b.reshape(1, -1, 1)

    def bn(x, p):
        gamma, beta, mean, var, eps = p
        return (x - mean.reshape(1, -1, 1)) / jnp.sqrt(var.reshape(1, -1, 1) + eps) \
            * gamma.reshape(1, -1, 1) + beta.reshape(1, -1, 1)

    selu = lambda v: SELU_SCALE * jnp.where(v > 0, v, SELU_ALPHA * (jnp.exp(v) - 1.0))

    out1 = selu(bn(conv1d_same(x_ncl, w1, b1), bn1))
    out2 = selu(bn(conv1d_same(x_ncl, w2, b2), bn2))
    out3 = conv1d_same(x_ncl, w3, b3)
    return selu(out1 + out2 + out3 + x_ncl)


if __name__ == "__main__":
    key = jax.random.PRNGKey(0)
    N, C, L = 4, 8, 128  # residual add requires in_channels == out_channels

    ks = jax.random.split(key, 8)
    x = jax.random.normal(ks[0], (N, C, L), jnp.float32)

    def mk_w(k, K):  # PyTorch Conv1d weight layout (C_out, C_in, K)
        return jax.random.normal(k, (C, C, K), jnp.float32) * 0.1

    w1, b1 = mk_w(ks[1], 3), jax.random.normal(ks[2], (C,), jnp.float32) * 0.05
    w2, b2 = mk_w(ks[3], 5), jax.random.normal(ks[4], (C,), jnp.float32) * 0.05
    w3, b3 = mk_w(ks[5], 7), jax.random.normal(ks[6], (C,), jnp.float32) * 0.05

    # BatchNorm eval params: (gamma, beta, running_mean, running_var, eps)
    idx = jnp.arange(C, dtype=jnp.float32)
    bn1 = (1.0 + 0.05 * idx, 0.02 * idx, 0.01 * idx, 1.0 + 0.1 * idx, 1e-5)
    bn2 = (1.0 - 0.03 * idx, -0.01 * idx, -0.02 * idx, 1.0 + 0.2 * idx, 1e-5)

    params = ((w1, b1), (w2, b2), (w3, b3), bn1, bn2)

    out = jax.block_until_ready(residual_block(x, params))
    ref = jax.block_until_ready(reference(x, params))

    assert out.shape == (N, C, L)
    err = float(jnp.max(jnp.abs(out - ref)))
    assert jnp.allclose(out, ref, atol=1e-4, rtol=1e-4), err

    print("KERNEL_OK")
</pallas_src>

<mosaic_0001>
module attributes {stable_mosaic.version = 11 : i64} {
  func.func @residual_block_kernel(%arg0: i32, %arg1: memref<2x8x128xf32, #tpu.memory_space<vmem>>, %arg2: memref<24x56xf32, #tpu.memory_space<vmem>>, %arg3: memref<24x1xf32, #tpu.memory_space<vmem>>, %arg4: memref<2x8x128xf32, #tpu.memory_space<vmem>>, %arg5: memref<8x256xf32, #tpu.memory_space<vmem>>, %arg6: memref<56x256xf32, #tpu.memory_space<vmem>>) attributes {dimension_semantics = [#tpu.dimension_semantics<parallel>], iteration_bounds = array<i64: 2>, scalar_prefetch = 0 : i64, scratch_operands = 2 : i64, tpu.core_type = #tpu.core_type<tc>, window_params = [{transform_indices = @transform_0, window_bounds = array<i64: 2, 8, 128>}, {pipeline_mode = #tpu.pipeline_mode<synchronous>, transform_indices = @transform_1, window_bounds = array<i64: 24, 56>}, {pipeline_mode = #tpu.pipeline_mode<synchronous>, transform_indices = @transform_2, window_bounds = array<i64: 24, 1>}, {transform_indices = @transform_3, window_bounds = array<i64: 2, 8, 128>}]} {
    %c0 = arith.constant 0 : index
    %c0_0 = arith.constant 0 : index
    %c0_1 = arith.constant 0 : index
    %0 = vector.load %arg1[%c0, %c0_0, %c0_1] : memref<2x8x128xf32, #tpu.memory_space<vmem>>, vector<1x8x128xf32>
    %1 = vector.shape_cast %0 : vector<1x8x128xf32> to vector<8x128xf32>
    %c0_2 = arith.constant 0 : index
    %c0_3 = arith.constant 0 : index
    %2 = vector.load %arg5[%c0_2, %c0_3] : memref<8x256xf32, #tpu.memory_space<vmem>>, vector<8x128xf32>
    tpu.vector_store %arg5[%c0_2, %c0_3], %1 {strides = array<i32>} : memref<8x256xf32, #tpu.memory_space<vmem>>, vector<8x128xf32>,
    %c1 = arith.constant 1 : index
    %c0_4 = arith.constant 0 : index
    %c0_5 = arith.constant 0 : index
    %3 = vector.load %arg1[%c1, %c0_4, %c0_5] : memref<2x8x128xf32, #tpu.memory_space<vmem>>, vector<1x8x128xf32>
    %4 = vector.shape_cast %3 : vector<1x8x128xf32> to vector<8x128xf32>
    %c0_6 = arith.constant 0 : index
    %c128 = arith.constant 128 : index
    %5 = vector.load %arg5[%c0_6, %c128] : memref<8x256xf32, #tpu.memory_space<vmem>>, vector<8x128xf32>
    tpu.vector_store %arg5[%c0_6, %c128], %4 {strides = array<i32>} : memref<8x256xf32, #tpu.memory_space<vmem>>, vector<8x128xf32>,
    %c0_7 = arith.constant 0 : index
    %c0_8 = arith.constant 0 : index
    %6 = vector.load %arg5[%c0_7, %c0_8] : memref<8x256xf32, #tpu.memory_space<vmem>>, vector<8x256xf32>
    %7 = tpu.iota {dimensions = array<i32: 1>} : vector<8x256xi32>
    %c128_i32 = arith.constant 128 : i32
    %c0_i32 = arith.constant 0 : i32
    %8 = arith.cmpi eq, %c128_i32, %c0_i32 : i32
    %c1_i32 = arith.constant 1 : i32
    %9 = arith.select %8, %c1_i32, %c128_i32 : i32
    %10 = vector.broadcast %9 : i32 to vector<8x256xi32>
    %11 = arith.remsi %7, %10 : vector<8x256xi32>
    %c0_i32_9 = arith.constant 0 : i32
    %12 = vector.broadcast %c0_i32_9 : i32 to vector<8x256xi32>
    %13 = arith.cmpi ne, %11, %12 : vector<8x256xi32>
    %c0_i32_10 = arith.constant 0 : i32
    %14 = vector.broadcast %c0_i32_10 : i32 to vector<8x256xi32>
    %15 = arith.cmpi slt, %11, %14 : vector<8x256xi32>
    %c0_i32_11 = arith.constant 0 : i32
    %16 = arith.cmpi slt, %9, %c0_i32_11 : i32
    %17 = vector.broadcast %16 : i1 to vector<8x256xi1>
    %18 = vector.broadcast %17 : vector<8x256xi1> to vector<8x256xi1>
    %19 = arith.xori %15, %18 : vector<8x256xi1>
    %20 = arith.andi %19, %13 : vector<8x256xi1>
    %21 = vector.broadcast %9 : i32 to vector<8x256xi32>
    %22 = arith.addi %11, %21 : vector<8x256xi32>
    %23 = arith.select %20, %22, %11 : vector<8x256xi1>, vector<8x256xi32>
    %c3_i32 = arith.constant 3 : i32
    %24 = tpu.dynamic_rotate %6 by %c3_i32 dim 1 : vector<8x256xf32>, i32 -> vector<8x256xf32>
    %c3_i32_12 = arith.constant 3 : i32
    %25 = vector.broadcast %c3_i32_12 : i32 to vector<8x256xi32>
    %26 = arith.cmpi sge, %23, %25 : vector<8x256xi32>
    %cst = arith.constant 0.000000e+00 : f32
    %27 = vector.broadcast %cst : f32 to vector<8x256xf32>
    %28 = arith.select %26, %24, %27 : vector<8x256xi1>, vector<8x256xf32>
    %c0_13 = arith.constant 0 : index
    %c0_14 = arith.constant 0 : index
    %29 = vector.load %arg6[%c0_13, %c0_14] : memref<56x256xf32, #tpu.memory_space<vmem>>, vector<8x256xf32>
    tpu.vector_store %arg6[%c0_13, %c0_14], %28 {strides = array<i32>} : memref<56x256xf32, #tpu.memory_space<vmem>>, vector<8x256xf32>,
    %c2_i32 = arith.constant 2 : i32
    %30 = tpu.dynamic_rotate %6 by %c2_i32 dim 1 : vector<8x256xf32>, i32 -> vector<8x256xf32>
    %c2_i32_15 = arith.constant 2 : i32
    %31 = vector.broadcast %c2_i32_15 : i32 to vector<8x256xi32>
    %32 = arith.cmpi sge, %23, %31 : vector<8x256xi32>
    %cst_16 = arith.constant 0.000000e+00 : f32
    %33 = vector.broadcast %cst_16 : f32 to vector<8x256xf32>
    %34 = arith.select %32, %30, %33 : vector<8x256xi1>, vector<8x256xf32>
    %c8 = arith.constant 8 : index
    %c0_17 = arith.constant 0 : index
    %35 = vector.load %arg6[%c8, %c0_17] : memref<56x256xf32, #tpu.memory_space<vmem>>, vector<8x256xf32>
    tpu.vector_store %arg6[%c8, %c0_17], %34 {strides = array<i32>} : memref<56x256xf32, #tpu.memory_space<vmem>>, vector<8x256xf32>,
    %c1_i32_18 = arith.constant 1 : i32
    %36 = tpu.dynamic_rotate %6 by %c1_i32_18 dim 1 : vector<8x256xf32>, i32 -> vector<8x256xf32>
    %c1_i32_19 = arith.constant 1 : i32
    %37 = vector.broadcast %c1_i32_19 : i32 to vector<8x256xi32>
    %38 = arith.cmpi sge, %23, %37 : vector<8x256xi32>
    %cst_20 = arith.constant 0.000000e+00 : f32
    %39 = vector.broadcast %cst_20 : f32 to vector<8x256xf32>
    %40 = arith.select %38, %36, %39 : vector<8x256xi1>, vector<8x256xf32>
    %c16 = arith.constant 16 : index
    %c0_21 = arith.constant 0 : index
    %41 = vector.load %arg6[%c16, %c0_21] : memref<56x256xf32, #tpu.memory_space<vmem>>, vector<8x256xf32>
    tpu.vector_store %arg6[%c16, %c0_21], %40 {strides = array<i32>} : memref<56x256xf32, #tpu.memory_space<vmem>>, vector<8x256xf32>,
    %c24 = arith.constant 24 : index
    %c0_22 = arith.constant 0 : index
    %42 = vector.load %arg6[%c24, %c0_22] : memref<56x256xf32, #tpu.memory_space<vmem>>, vector<8x256xf32>
    tpu.vector_store %arg6[%c24, %c0_22], %6 {strides = array<i32>} : memref<56x256xf32, #tpu.memory_space<vmem>>, vector<8x256xf32>,
    %c255_i32 = arith.constant 255 : i32
    %43 = tpu.dynamic_rotate %6 by %c255_i32 dim 1 : vector<8x256xf32>, i32 -> vector<8x256xf32>
    %c127_i32 = arith.constant 127 : i32
    %44 = vector.broadcast %c127_i32 : i32 to vector<8x256xi32>
    %45 = arith.cmpi slt, %23, %44 : vector<8x256xi32>
    %cst_23 = arith.constant 0.000000e+00 : f32
    %46 = vector.broadcast %cst_23 : f32 to vector<8x256xf32>
    %47 = arith.select %45, %43, %46 : vector<8x256xi1>, vector<8x256xf32>
    %c32 = arith.constant 32 : index
    %c0_24 = arith.constant 0 : index
    %48 = vector.load %arg6[%c32, %c0_24] : memref<56x256xf32, #tpu.memory_space<vmem>>, vector<8x256xf32>
    tpu.vector_store %arg6[%c32, %c0_24], %47 {strides = array<i32>} : memref<56x256xf32, #tpu.memory_space<vmem>>, vector<8x256xf32>,
    %c254_i32 = arith.constant 254 : i32
    %49 = tpu.dynamic_rotate %6 by %c254_i32 dim 1 : vector<8x256xf32>, i32 -> vector<8x256xf32>
    %c126_i32 = arith.constant 126 : i32
    %50 = vector.broadcast %c126_i32 : i32 to vector<8x256xi32>
    %51 = arith.cmpi slt, %23, %50 : vector<8x256xi32>
    %cst_25 = arith.constant 0.000000e+00 : f32
    %52 = vector.broadcast %cst_25 : f32 to vector<8x256xf32>
    %53 = arith.select %51, %49, %52 : vector<8x256xi1>, vector<8x256xf32>
    %c40 = arith.constant 40 : index
    %c0_26 = arith.constant 0 : index
    %54 = vector.load %arg6[%c40, %c0_26] : memref<56x256xf32, #tpu.memory_space<vmem>>, vector<8x256xf32>
    tpu.vector_store %arg6[%c40, %c0_26], %53 {strides = array<i32>} : memref<56x256xf32, #tpu.memory_space<vmem>>, vector<8x256xf32>,
    %c253_i32 = arith.constant 253 : i32
    %55 = tpu.dynamic_rotate %6 by %c253_i32 dim 1 : vector<8x256xf32>, i32 -> vector<8x256xf32>
    %c125_i32 = arith.constant 125 : i32
    %56 = vector.broadcast %c125_i32 : i32 to vector<8x256xi32>
    %57 = arith.cmpi slt, %23, %56 : vector<8x256xi32>
    %cst_27 = arith.constant 0.000000e+00 : f32
    %58 = vector.broadcast %cst_27 : f32 to vector<8x256xf32>
    %59 = arith.select %57, %55, %58 : vector<8x256xi1>, vector<8x256xf32>
    %c48 = arith.constant 48 : index
    %c0_28 = arith.constant 0 : index
    %60 = vector.load %arg6[%c48, %c0_28] : memref<56x256xf32, #tpu.memory_space<vmem>>, vector<8x256xf32>
    tpu.vector_store %arg6[%c48, %c0_28], %59 {strides = array<i32>} : memref<56x256xf32, #tpu.memory_space<vmem>>, vector<8x256xf32>,
    %c0_29 = arith.constant 0 : index
    %c0_30 = arith.constant 0 : index
    %61 = vector.load %arg2[%c0_29, %c0_30] : memref<24x56xf32, #tpu.memory_space<vmem>>, vector<24x56xf32>
    %c0_31 = arith.constant 0 : index
    %c0_32 = arith.constant 0 : index
    %62 = vector.load %arg6[%c0_31, %c0_32] : memref<56x256xf32, #tpu.memory_space<vmem>>, vector<56x256xf32>
    %cst_33 = arith.constant dense<0.000000e+00> : vector<24x256xf32>
    %63 = tpu.matmul %61, %62, %cst_33 {dimension_numbers = #tpu.dot_dimension_numbers<[1], [0], [0], [1], [0, 0, 1, 1], [], []>} : vector<24x56xf32>, vector<56x256xf32>, vector<24x256xf32> -> vector<24x256xf32>
    %c0_34 = arith.constant 0 : index
    %c0_35 = arith.constant 0 : index
    %64 = vector.load %arg3[%c0_34, %c0_35] : memref<24x1xf32, #tpu.memory_space<vmem>>, vector<24x1xf32>
    %65 = vector.broadcast %64 : vector<24x1xf32> to vector<24x256xf32>
    %66 = arith.addf %63, %65 : vector<24x256xf32>
    %67 = vector.extract_strided_slice %66 {offsets = [0, 0], sizes = [8, 256], strides = [1, 1]} : vector<24x256xf32> to vector<8x256xf32>
    %cst_36 = arith.constant 0.000000e+00 : f32
    %68 = vector.broadcast %cst_36 : f32 to vector<8x256xf32>
    %69 = arith.cmpf ogt, %67, %68 : vector<8x256xf32>
    %cst_37 = arith.constant 0.000000e+00 : f32
    %70 = vector.broadcast %cst_37 : f32 to vector<8x256xf32>
    %71 = arith.minimumf %67, %70 : vector<8x256xf32>
    %72 = math.exp %71 : vector<8x256xf32>
    %cst_38 = arith.constant 1.000000e+00 : f32
    %73 = vector.broadcast %cst_38 : f32 to vector<8x256xf32>
    %74 = arith.subf %72, %73 : vector<8x256xf32>
    %cst_39 = arith.constant 1.67326319 : f32
    %75 = vector.broadcast %cst_39 : f32 to vector<8x256xf32>
    %76 = arith.mulf %75, %74 : vector<8x256xf32>
    %77 = arith.select %69, %67, %76 : vector<8x256xi1>, vector<8x256xf32>
    %cst_40 = arith.constant 1.05070102 : f32
    %78 = vector.broadcast %cst_40 : f32 to vector<8x256xf32>
    %79 = arith.mulf %78, %77 : vector<8x256xf32>
    %80 = vector.extract_strided_slice %66 {offsets = [8, 0], sizes = [8, 256], strides = [1, 1]} : vector<24x256xf32> to vector<8x256xf32>
    %cst_41 = arith.constant 0.000000e+00 : f32
    %81 = vector.broadcast %cst_41 : f32 to vector<8x256xf32>
    %82 = arith.cmpf ogt, %80, %81 : vector<8x256xf32>
    %cst_42 = arith.constant 0.000000e+00 : f32
    %83 = vector.broadcast %cst_42 : f32 to vector<8x256xf32>
    %84 = arith.minimumf %80, %83 : vector<8x256xf32>
    %85 = math.exp %84 : vector<8x256xf32>
    %cst_43 = arith.constant 1.000000e+00 : f32
    %86 = vector.broadcast %cst_43 : f32 to vector<8x256xf32>
    %87 = arith.subf %85, %86 : vector<8x256xf32>
    %cst_44 = arith.constant 1.67326319 : f32
    %88 = vector.broadcast %cst_44 : f32 to vector<8x256xf32>
    %89 = arith.mulf %88, %87 : vector<8x256xf32>
    %90 = arith.select %82, %80, %89 : vector<8x256xi1>, vector<8x256xf32>
    %cst_45 = arith.constant 1.05070102 : f32
    %91 = vector.broadcast %cst_45 : f32 to vector<8x256xf32>
    %92 = arith.mulf %91, %90 : vector<8x256xf32>
    %93 = vector.extract_strided_slice %66 {offsets = [16, 0], sizes = [8, 256], strides = [1, 1]} : vector<24x256xf32> to vector<8x256xf32>
    %94 = arith.addf %79, %92 : vector<8x256xf32>
    %95 = arith.addf %94, %93 : vector<8x256xf32>
    %cst_46 = arith.constant 0.000000e+00 : f32
    %96 = vector.broadcast %cst_46 : f32 to vector<8x256xf32>
    %97 = arith.cmpf ogt, %95, %96 : vector<8x256xf32>
    %cst_47 = arith.constant 0.000000e+00 : f32
    %98 = vector.broadcast %cst_47 : f32 to vector<8x256xf32>
    %99 = arith.minimumf %95, %98 : vector<8x256xf32>
    %100 = math.exp %99 : vector<8x256xf32>
    %cst_48 = arith.constant 1.000000e+00 : f32
    %101 = vector.broadcast %cst_48 : f32 to vector<8x256xf32>
    %102 = arith.subf %100, %101 : vector<8x256xf32>
    %cst_49 = arith.constant 1.67326319 : f32
    %103 = vector.broadcast %cst_49 : f32 to vector<8x256xf32>
    %104 = arith.mulf %103, %102 : vector<8x256xf32>
    %105 = arith.select %97, %95, %104 : vector<8x256xi1>, vector<8x256xf32>
    %cst_50 = arith.constant 1.05070102 : f32
    %106 = vector.broadcast %cst_50 : f32 to vector<8x256xf32>
    %107 = arith.mulf %106, %105 : vector<8x256xf32>
    %108 = vector.extract_strided_slice %107 {offsets = [0, 0], sizes = [8, 128], strides = [1, 1]} : vector<8x256xf32> to vector<8x128xf32>
    %c0_51 = arith.constant 0 : index
    %c0_52 = arith.constant 0 : index
    %c0_53 = arith.constant 0 : index
    %109 = vector.load %arg4[%c0_51, %c0_52, %c0_53] : memref<2x8x128xf32, #tpu.memory_space<vmem>>, vector<1x8x128xf32>
    %110 = vector.shape_cast %109 : vector<1x8x128xf32> to vector<8x128xf32>
    %111 = vector.shape_cast %108 : vector<8x128xf32> to vector<1x8x128xf32>
    tpu.vector_store %arg4[%c0_51, %c0_52, %c0_53], %111 {strides = array<i32>} : memref<2x8x128xf32, #tpu.memory_space<vmem>>, vector<1x8x128xf32>,
    %112 = vector.extract_strided_slice %107 {offsets = [0, 128], sizes = [8, 128], strides = [1, 1]} : vector<8x256xf32> to vector<8x128xf32>
    %c1_54 = arith.constant 1 : index
    %c0_55 = arith.constant 0 : index
    %c0_56 = arith.constant 0 : index
    %113 = vector.load %arg4[%c1_54, %c0_55, %c0_56] : memref<2x8x128xf32, #tpu.memory_space<vmem>>, vector<1x8x128xf32>
    %114 = vector.shape_cast %113 : vector<1x8x128xf32> to vector<8x128xf32>
    %115 = vector.shape_cast %112 : vector<8x128xf32> to vector<1x8x128xf32>
    tpu.vector_store %arg4[%c1_54, %c0_55, %c0_56], %115 {strides = array<i32>} : memref<2x8x128xf32, #tpu.memory_space<vmem>>, vector<1x8x128xf32>,
    return
  }
  func.func @transform_0(%arg0: i32) -> (i32, i32, i32) {
    %c0_i32 = arith.constant 0 : i32
    %c0_i32_0 = arith.constant 0 : i32
    %c0_i32_1 = arith.constant 0 : i32
    return %arg0, %c0_i32, %c0_i32_0 : i32, i32, i32
  }
  func.func @transform_1(%arg0: i32) -> (i32, i32) {
    %c0_i32 = arith.constant 0 : i32
    %c0_i32_0 = arith.constant 0 : i32
    %c0_i32_1 = arith.constant 0 : i32
    return %c0_i32, %c0_i32_0 : i32, i32
  }
  func.func @transform_2(%arg0: i32) -> (i32, i32) {
    %c0_i32 = arith.constant 0 : i32
    %c0_i32_0 = arith.constant 0 : i32
    %c0_i32_1 = arith.constant 0 : i32
    return %c0_i32, %c0_i32_0 : i32, i32
  }
  func.func @transform_3(%arg0: i32) -> (i32, i32, i32) {
    %c0_i32 = arith.constant 0 : i32
    %c0_i32_0 = arith.constant 0 : i32
    %c0_i32_1 = arith.constant 0 : i32
    return %arg0, %c0_i32, %c0_i32_0 : i32, i32, i32
  }
}

</mosaic_0001>

<bundles_post_ra>
// kernel: tpu_custom_call.1
= control target key start
LH: loop header
LB: loop body
LE: loop exit
PB: predicated region body
PF: predicated region fallthrough
CT: control target
= control target key end

     0   :  { %8 = vsyncpa [#allocation5], 0  ;;  %s1329_s0 = inlined_call_operand.hbm [shape: f32[4,8,128], index: 0, kind: input, shape index: {}]   ;;  %s1330_s1 = inlined_call_operand.hbm [shape: f32[24,56], index: 1, kind: input, shape index: {}]   ;;  %s1331_s2 = inlined_call_operand.hbm [shape: f32[24,1], index: 2, kind: input, shape index: {}]   ;;  %s1332_s3 = inlined_call_operand.hbm [shape: f32[4,8,128], index: 3, kind: output, shape index: {}]  }
   0x1   :  { %10 = vsyncpa [#allocation5 + $0x1], 0 }
   0x2   :  { %11 = vsyncpa [#allocation8], 0 }
   0x3   :  { %12 = vsyncpa [#allocation6], 0 }
   0x4   :  { %14 = vsyncpa [#allocation6 + $0x1], 0  ;;  %s1006_s12 = smov 0   ;;  %s1008_s13 = smov 0  }
   0x5   :  { %s1010_s14 = smov 0   ;;  %s1012_s15 = smov 0  }
   0x6 LB: > { %s1027_s16 = sadd.s32 4294967295, %s967_s15   ;;  %s623_s17 = sadd.s32 4294967294, %s967_s15   ;;  %s967_s15 = sphi %s1012_s15, %s1354_s15   ;;  %s963_s14 = sphi %s1010_s14, %s1353_s14   ;;  %s959_s13 = sphi %s1008_s13, %s1352_s13   ;;  %s955_s12 = sphi %s1006_s12, %s1351_s12  }
   0x7   : > { %p40_p0 = scmp.ne.s32.totalorder %s959_s13, %s955_s12  ;;  %p1333_p1 = scmp.eq.s32.totalorder %s1027_s16, 0 }
   0x8   : > { %p112_p3 = scmp.eq.s32.totalorder %s623_s17, 1  ;;  %p624_p5 = scmp.ge.s32.totalorder %s967_s15, 1 }
   0x9   : > { %p1036_p4 = por %p1333_p1, %p40_p0  ;;  %p119_p7 = scmp.lt.s32.totalorder %s967_s15, 3 }
   0xa   : > { %p1041_p6 = por %p112_p3, %p40_p0  ;;  %s969_s21 = smov [#allocation7]  }
   0xb   : > { %s1336_s18 = scalar_select %p1036_p4, 1, 0 }
   0xc   : > { %s1337_s19 = scalar_select %p1041_p6, 1, 0 }
   0xd   : > { %p1046_p8 = pnand %p624_p5, %p119_p7  ;;  %s131_s22 = sshll.u32 %s969_s21, 4  ;;  %s1050_s22 = int_to_ptr.vmem [resolvable:$true] %s131_s22 }
   0xe   : > { %s970_s24 = smov [#allocation9]   ;;  %s811_s28 = scalar_lea.hbm %s1330_s1, 384 }
   0xf   : > { %p704_p9 = pneg %p1046_p8  ;;  %s144_s25 = sshll.u32 %s970_s24, 4  ;;  %s1061_s25 = int_to_ptr.vmem [resolvable:$true] %s144_s25 }
  0x10   : > { %p812_p12 = scmp.ne.s32.totalorder %s1330_s1, %s811_s28  ;;  %p818_p5 = scmp.lt.u32.totalorder %s811_s28, %s1330_s1 }
  0x11   : > { %p1057_p11 = pnand %p704_p9, %p1333_p1 }
  0x13   : > { %p813_p13 = pneg %p1057_p11 }
  0x15   : > { %p814_p0 = pnand %p813_p13, %p812_p12 }
  0x17   : > { %p815_p3 = pneg %p814_p0 }
  0x19   : > { %p820_p7 = pnand %p818_p5, %p815_p3 }
  0x1b   : > { %823 = shalt.err (!%p820_p7)
}
  0x1c   : > { %s824_s6 = scalar_lea.vmem %s1050_s22, 384  ;;  %p832_p2 = scmp.lt.s32.totalorder %s1050_s22, %s1050_s22 }
  0x1d   : > { %p825_p9 = scmp.ne.s32.totalorder %s1050_s22, %s824_s6  ;;  %p833_p12 = scmp.lt.s32.totalorder %s824_s6, %s824_s6 }
  0x1f   : > { %p827_p10 = pnand %p825_p9, %p813_p13  ;;  %p834_p0 = por %p833_p12, %p832_p2 }
  0x21   : > { %p828_p1 = pneg %p827_p10 }
  0x23   : > { %p835_p6 = pnand %p834_p0, %p828_p1 }
  0x25   : > { %838 = shalt.err (!%p835_p6)
}
  0x26   : > { %s971_s7 = smov 128   ;;  %s972_s8 = smov 8  }
  0x27   : > { %707 = dma.hbm_to_vmem [thread:$0]  (!%p1057_p11), %s1330_s1, 384, %s1050_s22, [#allocation8], %s971_s7, %s971_s7, %s972_s8  }
  0x28   : > { %s839_s21 = scalar_lea.hbm %s1331_s2, 384 }
  0x29   : > { %p840_p1 = scmp.ne.s32.totalorder %s1331_s2, %s839_s21  ;;  %p846_p10 = scmp.lt.u32.totalorder %s839_s21, %s1331_s2 }
  0x2b   : > { %p842_p2 = pnand %p840_p1, %p813_p13 }
  0x2d   : > { %p843_p6 = pneg %p842_p2 }
  0x2f   : > { %p848_p3 = pnand %p846_p10, %p843_p6 }
  0x31   : > { %851 = shalt.err (!%p848_p3)
}
  0x32   : > { %s852_s22 = scalar_lea.vmem %s1061_s25, 384  ;;  %p860_p12 = scmp.lt.s32.totalorder %s1061_s25, %s1061_s25 }
  0x33   : > { %p853_p5 = scmp.ne.s32.totalorder %s1061_s25, %s852_s22  ;;  %p861_p0 = scmp.lt.s32.totalorder %s852_s22, %s852_s22 }
  0x35   : > { %p855_p7 = pnand %p853_p5, %p813_p13  ;;  %p862_p1 = por %p861_p0, %p860_p12 }
  0x37   : > { %p856_p9 = pneg %p855_p7 }
  0x39   : > { %p863_p2 = pnand %p862_p1, %p856_p9 }
  0x3b   : > { %866 = shalt.err (!%p863_p2)
}
  0x3c   : > { %710 = dma.hbm_to_vmem [thread:$0]  (!%p1057_p11), %s1331_s2, 384, %s1061_s25, [#allocation8], %s971_s7, %s971_s7, %s972_s8  }
  0x3d   : > { %s1122_s23 = sadd.s32 1, %s967_s15   ;;  %s27_s4 = sadd.s32 1, %s963_s14 }
  0x3e   : > { %s24_s5 = ssub.s32 %s967_s15, %s1122_s23  ;;  %p34_p13 = scmp.ne.s32.totalorder %s963_s14, %s959_s13 }
  0x3f   : > { %p25_p6 = scmp.eq.s32.totalorder %s24_s5, 0  ;;  %p35_p10 = scmp.eq.s32.totalorder %s967_s15, 0 }
  0x40   : > { %p1340_p3 = scmp.eq.s32.totalorder %s1027_s16, 1  ;;  %p721_p7 = scmp.lt.s32.totalorder %s967_s15, 2 }
  0x41   : > { %s1138_s9 = scalar_select %p25_p6, %s963_s14, %s27_s4  }
  0x42   : > { %p1132_p5 = por %p1340_p3, %p34_p13  ;;  %p36_p9 = por %p35_p10, %p34_p13 }
  0x43   : > { %s158_s10 = sand.u32 1, %s963_s14   ;;  %s652_s25 = sshll.u32 %s967_s15, 8 }
  0x44   : > { %s1341_s6 = scalar_select %p1132_p5, 1, 0 }
  0x45   : > { %s628_s11 = sshll.u32 %s158_s10, 4  ;;  %s1145_s24 = scalar_lea.hbm %s1329_s0, %s652_s25 }
  0x46   : > { %s162_s26 = scalar_lea.vmem [#allocation4], %s628_s11  ;;  %p1149_p11 = pnand %p721_p7, %p36_p9 }
  0x47   : > { %s169_s27 = sshll.u32 %s162_s26, 4  ;;  %s1153_s22 = scalar_lea.sflag [#allocation5], %s158_s10  ;;  %s1147_s27 = int_to_ptr.vmem [resolvable:$true] %s169_s27 }
  0x48   : > { %s867_s29 = scalar_lea.hbm %s1145_s24, 256  ;;  %p869_p0 = pneg %p1149_p11 }
  0x49   : > { %p868_p12 = scmp.ne.s32.totalorder %s1145_s24, %s867_s29  ;;  %s872_s5 = scalar_lea.hbm %s1329_s0, 512 }
  0x4a   : > { %p873_p13 = scmp.lt.u32.totalorder %s1145_s24, %s1329_s0  ;;  %p874_p6 = scmp.lt.u32.totalorder %s872_s5, %s867_s29 }
  0x4b   : > { %p870_p1 = pnand %p869_p0, %p868_p12  ;;  %p876_p3 = scmp.lt.u32.totalorder %s867_s29, %s1145_s24 }
  0x4c   : > { %p875_p10 = por %p874_p6, %p873_p13 }
  0x4d   : > { %p871_p2 = pneg %p870_p1 }
  0x4e   : > { %p877_p7 = por %p876_p3, %p875_p10 }
  0x50   : > { %p878_p9 = pnand %p877_p7, %p871_p2 }
  0x52   : > { %881 = shalt.err (!%p878_p9)
}
  0x53   : > { %s882_s10 = scalar_lea.vmem %s1147_s27, 256  ;;  %s973_s17 = smov [#allocation4]  }
  0x54   : > { %p883_p12 = scmp.ne.s32.totalorder %s1147_s27, %s882_s10  ;;  %s887_s21 = sshll.u32 %s973_s17, 4  ;;  %s888_s21 = int_to_ptr.vmem [resolvable:$false] %s887_s21 }
  0x55   : > { %s889_s26 = scalar_lea.vmem %s888_s21, 512  ;;  %p890_p4 = scmp.lt.s32.totalorder %s1147_s27, %s888_s21 }
  0x56   : > { %p885_p1 = pnand %p883_p12, %p869_p0  ;;  %p891_p13 = scmp.lt.s32.totalorder %s889_s26, %s882_s10 }
  0x58   : > { %p886_p5 = pneg %p885_p1  ;;  %p892_p6 = por %p891_p13, %p890_p4 }
  0x5a   : > { %p893_p10 = pnand %p892_p6, %p886_p5 }
  0x5c   : > { %896 = shalt.err (!%p893_p10)
}
  0x5d   : > { %714 = dma.hbm_to_vmem [thread:$0]  (!%p1149_p11), %s1145_s24, 256, %s1147_s27, %s1153_s22, %s971_s7, %s971_s7, %s972_s8  }
  0x5e   : > { %181 = sbr.rel (%p1046_p8) target bundleno = 526 (0x20e), region = 32  ;;  %s1187_s29 = sand.u32 (!%p1046_p8), 1, %s959_s13  }
  0x5f   : > { %s632_s30 = sshll.u32 (!%p1046_p8), %s1187_s29, 4  ;;  %s184_s4 = scalar_lea.sflag (!%p1046_p8), [#allocation5], %s1187_s29 }
  0x60   : > { %s187_s28 = scalar_lea.vmem (!%p1046_p8), [#allocation4], %s632_s30  ;;  %p1343_p4 = scmp.ne.s32.totalorder (!%p1046_p8), %s1336_s18, 0 }
  0x65   : > { %942 = dma.done.wait (%p1343_p4), %s184_s4, 256  }
  0x66   : > { %944 = vsyncadd (%p1343_p4), %s184_s4, 4294967040  ;;  %p1344_p5 = scmp.eq.s32.totalorder %s1027_s16, 0 }
  0x68   : > { %946 = dma.done.wait (%p1344_p5), [#allocation8], 768   ;;  %p1345_p8 = pmov %p1344_p5 }
  0x69   : > { %v1201_v0 = vld [vmem:[%s187_s28] sm:$0xff]  ;;  %v636_v1 = vld [vmem:[%s187_s28 + $0x8] sm:$0xff]  ;;  %s974_s20 = smov 3   ;;  %s975_s7 = smov 1   ;;  %v980_v3 = vmov 0.0   ;;  %v981_v6 = vmov 0   ;;  %v227_v8 = vlaneseq }
  0x6a   : > { %948 = vsyncadd (%p1345_p8), [#allocation8], 4294966528  ;;  %v772_v2 = vpack.i.bf16 %v636_v1, %v1201_v0  ;;  %s976_s8 = smov 2   ;;  %s977_s24 = smov 127   ;;  %443 = vmatprep.mubr.f32.mxu0 %v980_v3  ;;  %449 = vmatprep.mubr.f32.mxu1 %v980_v3  ;;  %v351_v4 = vld [vmem:[#allocation9] sm:$0xff]  ;;  %v352_v5 = vld [vmem:[#allocation9 + $0x8] sm:$0xff] }
  0x6b   : > { %s978_s18 = smov 126   ;;  %s979_s27 = smov 125   ;;  %797 = vset.pattern.permute.xlu1 %v981_v6  ;;  %798 = vset.pattern.permute.xlu0 %v981_v6  ;;  %v353_v7 = vld [vmem:[#allocation9 + $0x10] sm:$0xff]  ;;  %v1207_v9 = vand.u32 127, %v227_v8  ;;  %vm982_vm12 = vmmov 1   ;;  %v334_v48 = vld [vmem:[#allocation7] sm:$0xff] }
  0x6c   : > { %773 = vrot.lane.b32.xlu0 %v772_v2, %s974_s20  ;;  %783 = vrot.lane.b32.xlu1 %v772_v2, %s975_s7  ;;  %v335_v49 = vld [vmem:[#allocation7 + $0x8] sm:$0xff]  ;;  %v336_v50 = vld [vmem:[#allocation7 + $0x10] sm:$0xff]  ;;  %s653_s22 = sshll.u32 %s1027_s16, 8  ;;  %s217_s5 = scalar_lea.vmem [#allocation10], %s632_s30 }
  0x6d   : > { %v229_v10 = vadd.s32 128, %v1207_v9  ;;  %vm284_vm0 = vcmp.lt.s32.totalorder %v1207_v9, 1  ;;  %vm258_vm1 = vcmp.lt.s32.totalorder %v1207_v9, 3  ;;  %vm271_vm2 = vcmp.lt.s32.totalorder %v1207_v9, 2  ;;  %s531_s11 = sshll.u32 %s217_s5, 4  ;;  %s1283_s17 = scalar_lea.hbm %s1332_s3, %s653_s22  ;;  %s1285_s11 = int_to_ptr.vmem [resolvable:$true] %s531_s11 }
  0x6e   : > { %vm261_vm3 = vcmp.ge.s32.totalorder %v1207_v9, 3  ;;  %vm274_vm6 = vcmp.ge.s32.totalorder %v1207_v9, 2  ;;  %vm299_vm7 = vcmp.lt.s32.totalorder %v1207_v9, 127  ;;  %vm312_vm8 = vcmp.lt.s32.totalorder %v1207_v9, 126  ;;  %s518_s16 = scalar_lea.sflag [#allocation6], %s1187_s29  ;;  %s897_s21 = scalar_lea.vmem %s1285_s11, 256 }
  0x6f   : > { %v1210_v13 = vand.u32 127, %v229_v10  ;;  %vm670_vm11 = vmpackc.low %vm274_vm6, %vm261_vm3  ;;  %vm287_vm14 = vcmp.ge.s32.totalorder %v1207_v9, 1  ;;  %vm325_vm3 = vcmp.lt.s32.totalorder %v1207_v9, 125  ;;  %vm369_vm6 = vcmask 457728   ;;  %p898_p11 = scmp.ne.s32.totalorder %s1285_s11, %s897_s21  ;;  %p1348_p0 = scmp.ne.s32.totalorder %s1341_s6, 0 }
  0x70   : > { %778 = vrot.lane.b32.xlu0 %v772_v2, %s976_s8  ;;  %788 = vrot.lane.b32.xlu1 %v772_v2, %s977_s24  ;;  %s983_s26 = smov [#allocation10]  }
  0x71   : > { %vm262_vm4 = vcmp.ge.s32.totalorder %v1210_v13, 3  ;;  %vm275_vm5 = vcmp.ge.s32.totalorder %v1210_v13, 2  ;;  %vm288_vm9 = vcmp.ge.s32.totalorder %v1210_v13, 1  ;;  %vm303_vm15 = vcmp.lt.s32.totalorder %v1210_v13, 127  ;;  %p899_p2 = pnand %p898_p11, %p1348_p0  ;;  %s901_s30 = sshll.u32 %s983_s26, 4  ;;  %s902_s30 = int_to_ptr.vmem [resolvable:$false] %s901_s30 }
  0x72   : > { %vm1228_vm10 = vmpackc.low %vm275_vm5, %vm262_vm4  ;;  %vm329_vm5 = vcmp.lt.s32.totalorder %v1210_v13, 125  ;;  %s903_s4 = scalar_lea.vmem %s902_s30, 512  ;;  %p904_p7 = scmp.lt.s32.totalorder %s1285_s11, %s902_s30 }
  0x73   : > { %vm673_vm13 = vmpackc.low %vm982_vm12, %vm288_vm9  ;;  %p900_p3 = pneg %p899_p2  ;;  %p905_p9 = scmp.lt.s32.totalorder %s903_s4, %s897_s21 }
  0x74   : > { %793 = vrot.lane.b32.xlu0 %v772_v2, %s978_s18  ;;  %321 = vrot.lane.b32.xlu1 %v1201_v0, %s979_s27  ;;  %vm682_vm4 = vmpackc.low %vm312_vm8, %vm299_vm7 }
  0x75   : > { %p906_p12 = por %p905_p9, %p904_p7 }
  0x77   : > { %p907_p1 = pnand %p906_p12, %p900_p3 }
  0x78   : > { %323 = vrot.lane.b32.xlu0 %v636_v1, %s979_s27  ;;  %356 = vperm.xlu1 %797, %v351_v4  }
  0x7c   : > { %361 = vperm.xlu0 %798, %v352_v5   ;;  %366 = vperm.xlu1 %797, %v353_v7  }
  0xde   : > { %v774_v11 = vpop.permute.xlu0 %773  ;;  %v784_v12 = vpop.permute.xlu1 %783 }
  0xdf   : > { %v786_v14 = vunpack.i.h.bf16 %v784_v12  ;;  %v785_v15 = vunpack.i.l.bf16 %v784_v12  ;;  %v776_v16 = vunpack.i.h.bf16 %v774_v11  ;;  %v775_v17 = vunpack.i.l.bf16 %v774_v11 }
  0xe1   : > { %v285_v19 = vsel %vm284_vm0, %v785_v15, %v786_v14  ;;  %v259_v25 = vsel %vm258_vm1, %v775_v17, %v776_v16  ;;  %v260_v28 = vsel %vm258_vm1, %v776_v16, %v775_v17  ;;  %v286_v30 = vsel %vm284_vm0, %v786_v14, %v785_v15  ;;  %vm676_vm1 = vmpackc.low %vm982_vm12, %vm287_vm14 }
  0xe2   : > { %v779_v18 = vpop.permute.xlu0 %778  ;;  %v789_v20 = vpop.permute.xlu1 %788  ;;  %v672_v31 = vpack.c.bf16 %v636_v1, %v285_v19  ;;  %vm316_vm0 = vcmp.lt.s32.totalorder %v1210_v13, 126  ;;  %v675_v38 = vpack.c.bf16 %v1201_v0, %v286_v30 }
  0xe3   : > { %v781_v21 = vunpack.i.h.bf16 %v779_v18  ;;  %v780_v22 = vunpack.i.l.bf16 %v779_v18  ;;  %v791_v23 = vunpack.i.h.bf16 %v789_v20  ;;  %v790_v24 = vunpack.i.l.bf16 %v789_v20 }
  0xe5   : > { %v272_v26 = vsel %vm271_vm2, %v780_v22, %v781_v21  ;;  %v273_v29 = vsel %vm271_vm2, %v781_v21, %v780_v22  ;;  %v301_v35 = vsel %vm299_vm7, %v791_v23, %v790_v24  ;;  %v300_v40 = vsel %vm299_vm7, %v790_v24, %v791_v23  ;;  %vm679_vm2 = vmpackc.low %vm316_vm0, %vm303_vm15 }
  0xe6   : > { %v666_v32 = vpack.c.bf16 %v272_v26, %v259_v25  ;;  %v669_v33 = vpack.c.bf16 %v273_v29, %v260_v28  ;;  %v794_v34 = vpop.permute.xlu0 %793  ;;  %v322_v43 = vpop.permute.xlu1 %321 }
  0xe7   : > { %v796_v36 = vunpack.i.h.bf16 %v794_v34  ;;  %v795_v37 = vunpack.i.l.bf16 %v794_v34 }
  0xe8   : > { %668 = vmatprep.subr.msk.bf16.mxu0 %vm1228_vm10, %v666_v32  ;;  %684 = vmatprep.subr.msk.bf16.mxu1 %vm1228_vm10, %v666_v32 }
  0xe9   : > { %671 = vmatpush1.bf16.msk.msra.mxu0 %vm670_vm11, %v669_v33  ;;  %688 = vmatpush1.bf16.msk.msra.mxu1 %vm670_vm11, %v669_v33  ;;  %v314_v39 = vsel %vm312_vm8, %v796_v36, %v795_v37  ;;  %v313_v41 = vsel %vm312_vm8, %v795_v37, %v796_v36 }
  0xea   : > { %v678_v42 = vpack.c.bf16 %v314_v39, %v301_v35  ;;  %674 = vmatprep.subr.msk.bf16.mxu0 %vm673_vm13, %v672_v31  ;;  %685 = vmatprep.subr.msk.bf16.mxu1 %vm673_vm13, %v672_v31  ;;  %v324_v44 = vpop.permute.xlu0 %323  ;;  %v681_v45 = vpack.c.bf16 %v313_v41, %v300_v40 }
  0xeb   : > { %v327_v46 = vsel %vm325_vm3, %v324_v44, %v322_v43  ;;  %v326_v47 = vsel %vm325_vm3, %v322_v43, %v324_v44 }
  0xed   : > { %677 = vmatpush1.bf16.msk.msra.mxu0 %vm676_vm1, %v675_v38  ;;  %689 = vmatpush1.bf16.msk.msra.mxu1 %vm676_vm1, %v675_v38 }
  0xee   : > { %680 = vmatprep.subr.msk.bf16.mxu0 %vm679_vm2, %v678_v42  ;;  %686 = vmatprep.subr.msk.bf16.mxu1 %vm679_vm2, %v678_v42 }
  0xf1   : > { %683 = vmatpush1.bf16.msk.msra.mxu0 %vm682_vm4, %v681_v45  ;;  %690 = vmatpush1.bf16.msk.msra.mxu1 %vm682_vm4, %v681_v45 }
  0xf2   : > { %664 = vmatprep.subr.msk.mxu0 %vm329_vm5, %v327_v46  ;;  %687 = vmatprep.subr.msk.mxu1 %vm329_vm5, %v327_v46 }
  0xf5   : > { %665 = vmatpush1.msk.msra.mxu0 %vm325_vm3, %v326_v47  ;;  %691 = vmatpush1.msk.msra.mxu1 %vm325_vm3, %v326_v47 }
  0xf6   : > { %637 = vmatmul.mubr.msk.f32.vlgmr.msra.gmra.mrb[0].mxu0 %vm369_vm6, %v334_v48  ;;  %638 = vmatmul.mubr.msk.f32.vlgmr.msra.gmra.mrb[0].mxu1 %vm369_vm6, %v335_v49 }
  0xf7   : > { %455 = vmatprep.mubr.f32.mxu1 %v980_v3  ;;  %v357_v52 = vpop.permute.xlu1 %356 }
  0xfa   : > { %639 = vmatmul.mubr.msk.f32.gmra.mrb[2].mxu1 %vm369_vm6, %v336_v50 }
  0xfb   : > { %v362_v51 = vpop.permute.xlu0 %361  ;;  %v367_v24 = vpop.permute.xlu1 %366 }
 0x1c9   : > { %v445_v53 = vpop.f32.mrb[0].mxu0  ;;  %v451_v54 = vpop.f32.mrb[0].mxu1 }
 0x1ca   : > { %v446_v55 = vadd.f32 %v445_v53, %v357_v52  ;;  %v452_v56 = vadd.f32 %v451_v54, %v362_v51  ;;  %v447_v57 = vpop.f32.mrb[1].mxu0  ;;  %v453_v58 = vpop.f32.mrb[1].mxu1 }
 0x1cb   : > { %v448_v59 = vadd.f32 %v447_v57, %v357_v52  ;;  %v454_v60 = vadd.f32 %v453_v58, %v362_v51 }
 0x1cc   : > { %v464_v61 = vmin.f32 %v446_v55, 0.0  ;;  %v480_v62 = vmin.f32 %v452_v56, 0.0  ;;  %vm462_vm7 = vcmp.gt.f32.partialorder %v446_v55, 0.0  ;;  %vm478_vm8 = vcmp.gt.f32.partialorder %v452_v56, 0.0 }
 0x1cd   : > { %v465_v63 = vmin.f32 %v448_v59, 0.0  ;;  %v481_v0 = vmin.f32 %v454_v60, 0.0  ;;  %v457_v1 = vpop.f32.mrb[2].mxu1  ;;  %vm463_vm9 = vcmp.gt.f32.partialorder %v448_v59, 0.0  ;;  %vm479_vm10 = vcmp.gt.f32.partialorder %v454_v60, 0.0 }
 0x1ce   : > { %v466_v2 = vmul.f32 1.442695, %v464_v61  ;;  %v482_v4 = vmul.f32 1.442695, %v480_v62  ;;  %v459_v3 = vpop.f32.mrb[3].mxu1  ;;  %v458_v28 = vadd.f32 %v457_v1, %v367_v24 }
 0x1cf   : > { %v468_v5 = vmul.f32 1.442695, %v465_v63  ;;  %v484_v6 = vmul.f32 1.442695, %v481_v0  ;;  %v460_v31 = vadd.f32 %v459_v3, %v367_v24 }
 0x1d0   : > { %799 = vpow2.f32 %v466_v2 }
 0x1d1   : > { %801 = vpow2.f32 %v482_v4 }
 0x1d2   : > { %803 = vpow2.f32 %v468_v5 }
 0x1d3   : > { %805 = vpow2.f32 %v484_v6 }
 0x1da   : > { %v800_v7 = vpop.eup %799 }
 0x1db   : > { %v802_v8 = vpop.eup %801  ;;  %v640_v9 = vadd.f32 -1.0, %v800_v7 }
 0x1dc   : > { %v804_v10 = vpop.eup %803  ;;  %v642_v11 = vadd.f32 -1.0, %v802_v8 }
 0x1dd   : > { %v806_v12 = vpop.eup %805  ;;  %v472_v13 = vmul.f32 1.6732632, %v640_v9  ;;  %v641_v14 = vadd.f32 -1.0, %v804_v10 }
 0x1de   : > { %v488_v15 = vmul.f32 1.6732632, %v642_v11  ;;  %v643_v16 = vadd.f32 -1.0, %v806_v12 }
 0x1df   : > { %v474_v17 = vsel %vm462_vm7, %v446_v55, %v472_v13  ;;  %v473_v18 = vmul.f32 1.6732632, %v641_v14 }
 0x1e0   : > { %v476_v19 = vmul.f32 1.050701, %v474_v17  ;;  %v490_v20 = vsel %vm478_vm8, %v452_v56, %v488_v15  ;;  %v489_v21 = vmul.f32 1.6732632, %v643_v16 }
 0x1e1   : > { %v492_v22 = vmul.f32 1.050701, %v490_v20  ;;  %v475_v23 = vsel %vm463_vm9, %v448_v59, %v473_v18 }
 0x1e2   : > { %v477_v25 = vmul.f32 1.050701, %v475_v23  ;;  %v491_v26 = vsel %vm479_vm10, %v454_v60, %v489_v21 }
 0x1e3   : > { %v493_v27 = vmul.f32 1.050701, %v491_v26  ;;  %v494_v29 = vadd.f32 %v492_v22, %v476_v19 }
 0x1e5   : > { %v496_v30 = vadd.f32 %v494_v29, %v458_v28  ;;  %v495_v32 = vadd.f32 %v493_v27, %v477_v25 }
 0x1e7   : > { %v500_v33 = vmin.f32 %v496_v30, 0.0  ;;  %v497_v34 = vadd.f32 %v495_v32, %v460_v31  ;;  %vm498_vm11 = vcmp.gt.f32.partialorder %v496_v30, 0.0 }
 0x1e9   : > { %v502_v35 = vmul.f32 1.442695, %v500_v33  ;;  %v501_v36 = vmin.f32 %v497_v34, 0.0  ;;  %vm499_vm12 = vcmp.gt.f32.partialorder %v497_v34, 0.0 }
 0x1eb   : > { %807 = vpow2.f32 %v502_v35  ;;  %v504_v37 = vmul.f32 1.442695, %v501_v36 }
 0x1ed   : > { %809 = vpow2.f32 %v504_v37 }
 0x1f5   : > { %v808_v38 = vpop.eup %807 }
 0x1f6   : > { %v644_v39 = vadd.f32 -1.0, %v808_v38 }
 0x1f7   : > { %v810_v40 = vpop.eup %809 }
 0x1f8   : > { %v508_v41 = vmul.f32 1.6732632, %v644_v39  ;;  %v645_v42 = vadd.f32 -1.0, %v810_v40 }
 0x1fa   : > { %v510_v43 = vsel %vm498_vm11, %v496_v30, %v508_v41  ;;  %v509_v44 = vmul.f32 1.6732632, %v645_v42 }
 0x1fb   : > { %v512_v45 = vmul.f32 1.050701, %v510_v43 }
 0x1fc   : > { %v511_v46 = vsel %vm499_vm12, %v497_v34, %v509_v44 }
 0x1fd   : > { %514 = vst [vmem:[%s217_s5] sm:$0xff] %v512_v45  ;;  %v513_v47 = vmul.f32 1.050701, %v511_v46 }
 0x1ff   : > { %646 = vst [vmem:[%s217_s5 + $0x8] sm:$0xff] %v513_v47 }
 0x200   : > { %910 = shalt.err (!%p907_p1)
}
 0x201   : > { %s911_s28 = scalar_lea.hbm %s1283_s17, 256  ;;  %s915_s8 = scalar_lea.hbm %s1332_s3, 512 }
 0x202   : > { %p912_p13 = scmp.ne.s32.totalorder %s1283_s17, %s911_s28  ;;  %p916_p4 = scmp.lt.u32.totalorder %s1283_s17, %s1332_s3 }
 0x203   : > { %p917_p5 = scmp.lt.u32.totalorder %s915_s8, %s911_s28  ;;  %p919_p11 = scmp.lt.u32.totalorder %s911_s28, %s1283_s17 }
 0x204   : > { %p913_p6 = pnand %p912_p13, %p1348_p0 }
 0x205   : > { %p918_p8 = por %p917_p5, %p916_p4 }
 0x206   : > { %p914_p10 = pneg %p913_p6 }
 0x207   : > { %p920_p2 = por %p919_p11, %p918_p8 }
 0x209   : > { %p921_p3 = pnand %p920_p2, %p914_p10 }
 0x20b   : > { %924 = shalt.err (!%p921_p3)
}
 0x20c   : > { %s984_s27 = smov 128   ;;  %s985_s22 = smov 8  }
 0x20d   : > { %702 = dma.vmem_to_hbm [thread:$0]  (%p1348_p0), %s1285_s11, 256, %s1283_s17, %s518_s16, %s984_s27, %s984_s27, %s985_s22  }
 0x20e PF: > { %s546_s5 = sand.u32 1, %s955_s12   ;;  %p1349_p7 = scmp.ne.s32.totalorder %s1337_s19, 0 }
 0x20f   : > { %p1350_p9 = scmp.ge.s32.totalorder %s967_s15, 2  ;;  %s547_s25 = scalar_lea.sflag [#allocation6], %s546_s5 }
 0x211   : > { %p716_p12 = pnand %p1350_p9, %p1349_p7 }
 0x213   : > { %950 = dma.done.wait (!%p716_p12), %s547_s25, 256  }
 0x214   : > { %952 = vsyncadd (!%p716_p12), %s547_s25, 4294967040  ;;  %p17_p1 = scmp.ge.s32.totalorder %s1122_s23, 4   ;;  %s1351_s12 = smov %s959_s13 }
 0x215   : > { %s1352_s13 = smov %s963_s14  ;;  %s1353_s14 = smov %s1138_s9 }
 0x216   : > { %s1354_s15 = smov %s1122_s23  ;;  %19 = sbr.rel (!%p17_p1) target bundleno = 6 (0x6), region = 87 }
 0x21d   :  { %552 = vsyncpa [#allocation5], 1 }
 0x21e   :  { %554 = vsyncpa [#allocation5 + $0x1], 1 }
 0x21f   :  { %555 = vsyncpa [#allocation8], 1 }
 0x220   :  { %556 = vsyncpa [#allocation6], 1 }
 0x221   :  { %558 = vsyncpa [#allocation6 + $0x1], 1 }

</bundles_post_ra>
